<compile_context>
chip_gen: v7x
topology: tpu7x:2x2x1
jax: 0.10.0
libtpu: 0.0.40
codegen_flags: <defaults>
</compile_context>

<pallas_src>
import jax
import jax.numpy as jnp
from jax import lax
from jax.experimental import pallas as pl
from jax.experimental.pallas import tpu as pltpu

BN_EPS = 1e-5
_SOFTPLUS_THRESHOLD = 20.0


# ----------------------------------------------------------------------------
# Fused kernel: pass 0 = Linear1 + BN statistics, pass 1 = folded BN + Linear2
# + clamp(beta) softplus + global sum.  h is recomputed on the MXU in pass 1.
# ----------------------------------------------------------------------------
def _make_kernel(tile_n, n_valid, num_comm, need_mask, gathered_beta):
    inv_n = 1.0 / float(n_valid)

    def body(xT_ref, w1_ref, b1_ref, g_ref, bb_ref, w2_ref, b2_ref,
             beta_node_fn, out_ref, sum_sc, ssq_sc, weff_sc, beff_sc):
        p = pl.program_id(0)                       # pass: 0 = stats, 1 = epilogue
        j = pl.program_id(1)                       # node tile
        is_last = j == pl.num_programs(1) - 1

        # h^T = W1 @ x^T + b1: (HH, H) @ (H, TN) -> (HH, TN), nodes on lanes.
        # Recomputed in pass 1 so the intermediate never touches HBM.
        h = jnp.dot(w1_ref[...], xT_ref[...], preferred_element_type=jnp.float32)
        h = h + b1_ref[...]                        # (HH, 1) bias broadcast

        def tail_mask():                           # (1, TN) lane mask, last tile only
            lane = lax.broadcasted_iota(jnp.int32, (1, tile_n), 1) + j * tile_n
            return lane < n_valid

        # -------- pass 0: per-feature sum / sum-of-squares accumulators -----
        @pl.when(p == 0)
        def _():
            @pl.when(j == 0)
            def _():
                sum_sc[...] = jnp.zeros_like(sum_sc)
                ssq_sc[...] = jnp.zeros_like(ssq_sc)
                out_ref[...] = jnp.zeros_like(out_ref)

            def accum(hm):
                sum_sc[...] += jnp.sum(hm, axis=1, keepdims=True)        # (HH, 1)
                ssq_sc[...] += jnp.sum(hm * hm, axis=1, keepdims=True)   # (HH, 1)

            if need_mask:
                @pl.when(is_last)
                def _():
                    accum(jnp.where(tail_mask(), h, 0.0))

                @pl.when(jnp.logical_not(is_last))
                def _():
                    accum(h)
            else:
                accum(h)

        # -------- pass 1: fold BN into Linear2, softplus, scalar sum --------
        @pl.when(p == 1)
        def _():
            @pl.when(j == 0)
            def _():
                # Fold BN batch stats into Linear2: lam = h . w_eff + b_eff
                mean = sum_sc[...] * inv_n
                var = jnp.maximum(ssq_sc[...] * inv_n - mean * mean, 0.0)
                scale = g_ref[...] * lax.rsqrt(var + BN_EPS)
                shift = bb_ref[...] - mean * scale
                weff_sc[...] = scale * w2_ref[...]                       # (HH, 1)
                beff_sc[...] = (jnp.sum(shift * w2_ref[...], axis=0,
                                        keepdims=True) + b2_ref[0])      # (1, 1)

            lam = (jnp.sum(h * weff_sc[...], axis=0, keepdims=True)
                   + beff_sc[...])                                       # (1, TN)

            beta_n = jnp.maximum(beta_node_fn(), 0.0)                    # clamp(min=0)

            # Numerically stable softplus: log1p(exp(z)) -> z for large z.
            z = lam * beta_n
            sp = jnp.where(z > _SOFTPLUS_THRESHOLD, z,
                           jnp.log1p(jnp.exp(jnp.minimum(z, _SOFTPLUS_THRESHOLD))))
            val = sp * pl.reciprocal(beta_n, approx=True)                # (1, TN)

            if need_mask:
                @pl.when(is_last)
                def _():
                    out_ref[...] += jnp.sum(jnp.where(tail_mask(), val, 0.0),
                                            keepdims=True)

                @pl.when(jnp.logical_not(is_last))
                def _():
                    out_ref[...] += jnp.sum(val, keepdims=True)
            else:
                out_ref[...] += jnp.sum(val, keepdims=True)              # (1, 1)

    if gathered_beta:
        # Per-node beta was pre-gathered in the wrapper -> lane-dense f32 tile.
        def kernel(xT_ref, w1_ref, b1_ref, g_ref, bb_ref, w2_ref, b2_ref,
                   betan_ref, out_ref, sum_sc, ssq_sc, weff_sc, beff_sc):
            body(xT_ref, w1_ref, b1_ref, g_ref, bb_ref, w2_ref, b2_ref,
                 lambda: betan_ref[...], out_ref, sum_sc, ssq_sc, weff_sc, beff_sc)
    else:
        # Small C: C-way select chain over SMEM scalars (no (N, C) one-hot).
        def kernel(xT_ref, w1_ref, b1_ref, g_ref, bb_ref, w2_ref, b2_ref,
                   beta_ref, cid_ref, out_ref, sum_sc, ssq_sc, weff_sc, beff_sc):
            def beta_from_cid():
                cid = cid_ref[...]                                       # (1, TN)
                b = jnp.full((1, tile_n), beta_ref[0], jnp.float32)
                for c in range(1, num_comm):
                    b = jnp.where(cid == c, beta_ref[c], b)
                return b
            body(xT_ref, w1_ref, b1_ref, g_ref, bb_ref, w2_ref, b2_ref,
                 beta_from_cid, out_ref, sum_sc, ssq_sc, weff_sc, beff_sc)

    return kernel


# ----------------------------------------------------------------------------
# Wrapper
# ----------------------------------------------------------------------------
def node_intensity_forward(hidden_states, comm_id, params):
    """hidden_states: (N, H) float, comm_id: (N,) int. Returns a scalar f32."""
    n, h_dim = hidden_states.shape
    hh = params["w1"].shape[0]                 # hidden_dim // 2
    num_comm = params["beta"].shape[0]
    gathered_beta = num_comm >= 8

    # Node tiling: single full tile for small N; otherwise 1024-node,
    # lane-aligned tiles (double-buffered by BlockSpec), shrunk if the
    # double-buffered x^T tiles would blow a conservative VMEM budget.
    if n <= 1024:
        tile_n = n
    else:
        tile_n = 1024
        while tile_n > 256 and 2 * tile_n * (2 * h_dim + 8) > 16 * 1024 * 1024:
            tile_n //= 2
    n_pad = ((n + tile_n - 1) // tile_n) * tile_n
    need_mask = n_pad != n
    n_tiles = n_pad // tile_n
    grid = (2, n_tiles)                        # (pass, node tile), pass outermost

    # Layout plumbing only: node axis -> 128-lane axis, bf16 operands for MXU.
    # TODO(synk): ideally the producer emits (H, N) bf16 directly; this cast +
    # transpose is a separate XLA pass over x in a memory-bound regime.
    xT = hidden_states.astype(jnp.bfloat16).T                 # (H, N)
    if need_mask:
        xT = jnp.pad(xT, ((0, 0), (0, n_pad - n)))
    w1 = params["w1"].astype(jnp.bfloat16)                    # (HH, H)

    if gathered_beta:
        aux = params["beta"][comm_id].astype(jnp.float32).reshape(1, n)
        if need_mask:                                         # pad with 1.0: safe 1/beta
            aux = jnp.pad(aux, ((0, 0), (0, n_pad - n)), constant_values=1.0)
    else:
        aux = comm_id.astype(jnp.int32).reshape(1, n)
        if need_mask:
            aux = jnp.pad(aux, ((0, 0), (0, n_pad - n)))

    smem_spec = pl.BlockSpec(memory_space=pltpu.MemorySpace.SMEM)

    def resident(shape):
        return pl.BlockSpec(shape, lambda p, j: (0, 0))

    in_specs = [
        pl.BlockSpec((h_dim, tile_n), lambda p, j: (0, j)),   # x^T tile (both passes)
        resident((hh, h_dim)),                                # W1 (resident)
        resident((hh, 1)),                                    # b1
        resident((hh, 1)),                                    # bn gamma
        resident((hh, 1)),                                    # bn beta
        resident((hh, 1)),                                    # w2
        smem_spec,                                            # b2   (1,)  SMEM
    ]
    args = [xT, w1, params["b1"], params["bn_gamma"], params["bn_beta"],
            params["w2"], params["b2"]]
    if gathered_beta:
        in_specs.append(pl.BlockSpec((1, tile_n), lambda p, j: (0, j)))  # beta[cid]
        args.append(aux)
    else:
        in_specs.append(smem_spec)                                       # beta (C,)
        in_specs.append(pl.BlockSpec((1, tile_n), lambda p, j: (0, j)))  # comm_id
        args.extend([params["beta"], aux])

    out = pl.pallas_call(
        _make_kernel(tile_n, n, num_comm, need_mask, gathered_beta),
        grid=grid,
        in_specs=in_specs,
        out_specs=pl.BlockSpec((1, 1), lambda p, j: (0, 0)),
        out_shape=jax.ShapeDtypeStruct((1, 1), jnp.float32),
        scratch_shapes=[
            pltpu.VMEM((hh, 1), jnp.float32),   # per-feature sum
            pltpu.VMEM((hh, 1), jnp.float32),   # per-feature sum of squares
            pltpu.VMEM((hh, 1), jnp.float32),   # folded w_eff = scale * w2
            pltpu.VMEM((1, 1), jnp.float32),    # folded b_eff
        ],
        compiler_params=pltpu.CompilerParams(
            dimension_semantics=("arbitrary", "arbitrary"),
            vmem_limit_bytes=32 * 1024 * 1024),               # safe on v5e/v6e/v7x
        cost_estimate=pl.CostEstimate(
            flops=int(2 * (2 * n_pad * h_dim * hh) + 12 * n_pad * hh),
            transcendentals=int(3 * n_pad + hh),
            bytes_accessed=int(2 * (2 * n_pad * h_dim) + 4 * n_pad
                               + 4 * (2 * h_dim * hh + 8 * hh))),
    )(*args)

    return out[0, 0]


# ----------------------------------------------------------------------------
# Parameters (PyTorch default inits) and a pure-JAX reference
# ----------------------------------------------------------------------------
def init_params(key, hidden_dim, num_communities):
    half = hidden_dim // 2
    k1, k2, k3, k4, k5 = jax.random.split(key, 5)
    bound1 = 1.0 / jnp.sqrt(hidden_dim)
    bound2 = 1.0 / jnp.sqrt(half)
    return {
        # PyTorch (out_features, in_features) layout -> works directly as W @ x^T
        "w1": jax.random.uniform(k1, (half, hidden_dim), jnp.float32, -bound1, bound1),
        "b1": jax.random.uniform(k2, (half, 1), jnp.float32, -bound1, bound1),
        "w2": jax.random.uniform(k3, (half, 1), jnp.float32, -bound2, bound2),
        "b2": jax.random.uniform(k4, (1,), jnp.float32, -bound2, bound2),
        "bn_gamma": jnp.ones((half, 1), jnp.float32),
        "bn_beta": jnp.zeros((half, 1), jnp.float32),
        # self.beta = nn.Parameter(torch.rand(num_communities))  -> U[0, 1)
        "beta": jax.random.uniform(k5, (num_communities,), jnp.float32, 0.0, 1.0),
    }


def node_intensity_reference(hidden_states, comm_id, params):
    x = hidden_states.astype(jnp.float32)
    h = x @ params["w1"].T + params["b1"][:, 0]
    mean = jnp.mean(h, axis=0)
    var = jnp.mean((h - mean) ** 2, axis=0)
    h = (h - mean) / jnp.sqrt(var + BN_EPS)
    h = h * params["bn_gamma"][:, 0] + params["bn_beta"][:, 0]
    lam = h @ params["w2"][:, 0] + params["b2"][0]
    beta = jnp.maximum(params["beta"][comm_id], 0.0)
    return jnp.sum(jax.nn.softplus(lam * beta) / beta)


if __name__ == "__main__":
    # --- test 1: single-tile path, small C (select chain over SMEM betas) ---
    N, HIDDEN, NUM_COMM = 8, 32, 4
    key = jax.random.PRNGKey(0)
    k_x, k_c, k_p = jax.random.split(key, 3)
    hidden_states = jax.random.normal(k_x, (N, HIDDEN), jnp.float32)
    comm_id = jax.random.randint(k_c, (N,), 0, NUM_COMM, jnp.int32)
    params = init_params(k_p, HIDDEN, NUM_COMM)

    lambda_t = node_intensity_forward(hidden_states, comm_id, params)
    jax.block_until_ready(lambda_t)
    ref = node_intensity_reference(hidden_states, comm_id, params)
    got, want = float(lambda_t), float(ref)
    assert jnp.isfinite(lambda_t), "kernel produced non-finite output"
    assert abs(got - want) <= 0.05 * abs(want) + 0.1, (got, want)

    # --- test 2: multi-tile masked path, larger C (pre-gathered beta) -------
    N2, C2 = 2500, 16
    k_x2, k_c2, k_p2 = jax.random.split(jax.random.PRNGKey(1), 3)
    hs2 = jax.random.normal(k_x2, (N2, HIDDEN), jnp.float32)
    cid2 = jax.random.randint(k_c2, (N2,), 0, C2, jnp.int32)
    params2 = init_params(k_p2, HIDDEN, C2)

    lambda_t2 = node_intensity_forward(hs2, cid2, params2)
    jax.block_until_ready(lambda_t2)
    ref2 = node_intensity_reference(hs2, cid2, params2)
    got2, want2 = float(lambda_t2), float(ref2)
    assert jnp.isfinite(lambda_t2), "kernel produced non-finite output"
    assert abs(got2 - want2) <= 0.05 * abs(want2) + 1.0, (got2, want2)

    print("KERNEL_OK")
</pallas_src>

<mosaic_0001>
module attributes {stable_mosaic.version = 11 : i64} {
  func.func @kernel(%arg0: i32, %arg1: i32, %arg2: memref<32x8xbf16, #tpu.memory_space<vmem>>, %arg3: memref<16x32xbf16, #tpu.memory_space<vmem>>, %arg4: memref<16x1xf32, #tpu.memory_space<vmem>>, %arg5: memref<16x1xf32, #tpu.memory_space<vmem>>, %arg6: memref<16x1xf32, #tpu.memory_space<vmem>>, %arg7: memref<16x1xf32, #tpu.memory_space<vmem>>, %arg8: memref<1xf32, #tpu.memory_space<smem>>, %arg9: memref<4xf32, #tpu.memory_space<smem>>, %arg10: memref<1x8xi32, #tpu.memory_space<vmem>>, %arg11: memref<1x1xf32, #tpu.memory_space<vmem>>, %arg12: memref<16x1xf32, #tpu.memory_space<vmem>>, %arg13: memref<16x1xf32, #tpu.memory_space<vmem>>, %arg14: memref<16x1xf32, #tpu.memory_space<vmem>>, %arg15: memref<1x1xf32, #tpu.memory_space<vmem>>) attributes {dimension_semantics = [#tpu.dimension_semantics<arbitrary>, #tpu.dimension_semantics<arbitrary>], iteration_bounds = array<i64: 2, 1>, scalar_prefetch = 0 : i64, scratch_operands = 4 : i64, tpu.core_type = #tpu.core_type<tc>, window_params = [{transform_indices = @transform_0, window_bounds = array<i64: 32, 8>}, {pipeline_mode = #tpu.pipeline_mode<synchronous>, transform_indices = @transform_1, window_bounds = array<i64: 16, 32>}, {pipeline_mode = #tpu.pipeline_mode<synchronous>, transform_indices = @transform_2, window_bounds = array<i64: 16, 1>}, {pipeline_mode = #tpu.pipeline_mode<synchronous>, transform_indices = @transform_3, window_bounds = array<i64: 16, 1>}, {pipeline_mode = #tpu.pipeline_mode<synchronous>, transform_indices = @transform_4, window_bounds = array<i64: 16, 1>}, {pipeline_mode = #tpu.pipeline_mode<synchronous>, transform_indices = @transform_5, window_bounds = array<i64: 16, 1>}, {transform_indices = @transform_6, window_bounds = array<i64: 1>}, {transform_indices = @transform_7, window_bounds = array<i64: 4>}, {transform_indices = @transform_8, window_bounds = array<i64: 1, 8>}, {pipeline_mode = #tpu.pipeline_mode<synchronous>, transform_indices = @transform_9, window_bounds = array<i64: 1, 1>}]} {
    %c0 = arith.constant 0 : index
    %c0_0 = arith.constant 0 : index
    %0 = vector.load %arg3[%c0, %c0_0] : memref<16x32xbf16, #tpu.memory_space<vmem>>, vector<16x32xbf16>
    %c0_1 = arith.constant 0 : index
    %c0_2 = arith.constant 0 : index
    %1 = vector.load %arg2[%c0_1, %c0_2] : memref<32x8xbf16, #tpu.memory_space<vmem>>, vector<32x8xbf16>
    %cst = arith.constant dense<0.000000e+00> : vector<16x8xf32>
    %2 = tpu.matmul %0, %1, %cst {dimension_numbers = #tpu.dot_dimension_numbers<[1], [0], [0], [1], [0, 0, 1, 1], [], []>} : vector<16x32xbf16>, vector<32x8xbf16>, vector<16x8xf32> -> vector<16x8xf32>
    %c0_3 = arith.constant 0 : index
    %c0_4 = arith.constant 0 : index
    %3 = vector.load %arg4[%c0_3, %c0_4] : memref<16x1xf32, #tpu.memory_space<vmem>>, vector<16x1xf32>
    %4 = vector.broadcast %3 : vector<16x1xf32> to vector<16x8xf32>
    %5 = arith.addf %2, %4 : vector<16x8xf32>
    %c0_i32 = arith.constant 0 : i32
    %6 = arith.cmpi eq, %arg0, %c0_i32 : i32
    %7 = arith.extui %6 : i1 to i32
    %c0_i32_5 = arith.constant 0 : i32
    %8 = arith.cmpi ne, %7, %c0_i32_5 : i32
    scf.if %8 {
      %c0_i32_7 = arith.constant 0 : i32
      %12 = arith.cmpi eq, %arg1, %c0_i32_7 : i32
      %13 = arith.extui %12 : i1 to i32
      %c0_i32_8 = arith.constant 0 : i32
      %14 = arith.cmpi ne, %13, %c0_i32_8 : i32
      scf.if %14 {
        %cst_19 = arith.constant 0.000000e+00 : f32
        %26 = vector.broadcast %cst_19 : f32 to vector<16x1xf32>
        %c0_20 = arith.constant 0 : index
        %c0_21 = arith.constant 0 : index
        %27 = vector.load %arg12[%c0_20, %c0_21] : memref<16x1xf32, #tpu.memory_space<vmem>>, vector<16x1xf32>
        tpu.vector_store %arg12[%c0_20, %c0_21], %26 {strides = array<i32>} : memref<16x1xf32, #tpu.memory_space<vmem>>, vector<16x1xf32>,
        %cst_22 = arith.constant 0.000000e+00 : f32
        %28 = vector.broadcast %cst_22 : f32 to vector<16x1xf32>
        %c0_23 = arith.constant 0 : index
        %c0_24 = arith.constant 0 : index
        %29 = vector.load %arg13[%c0_23, %c0_24] : memref<16x1xf32, #tpu.memory_space<vmem>>, vector<16x1xf32>
        tpu.vector_store %arg13[%c0_23, %c0_24], %28 {strides = array<i32>} : memref<16x1xf32, #tpu.memory_space<vmem>>, vector<16x1xf32>,
        %cst_25 = arith.constant 0.000000e+00 : f32
        %30 = vector.broadcast %cst_25 : f32 to vector<1x1xf32>
        %c0_26 = arith.constant 0 : index
        %c0_27 = arith.constant 0 : index
        %31 = vector.load %arg11[%c0_26, %c0_27] : memref<1x1xf32, #tpu.memory_space<vmem>>, vector<1x1xf32>
        tpu.vector_store %arg11[%c0_26, %c0_27], %30 {strides = array<i32>} : memref<1x1xf32, #tpu.memory_space<vmem>>, vector<1x1xf32>,
      } else {
      }
      %c0_9 = arith.constant 0 : index
      %c0_10 = arith.constant 0 : index
      %15 = vector.load %arg12[%c0_9, %c0_10] : memref<16x1xf32, #tpu.memory_space<vmem>>, vector<16x1xf32>
      %cst_11 = arith.constant dense<0.000000e+00> : vector<16xf32>
      %16 = vector.multi_reduction <add>, %5, %cst_11 [1] : vector<16x8xf32> to vector<16xf32>
      %17 = vector.shape_cast %16 : vector<16xf32> to vector<16x1xf32>
      %18 = arith.addf %15, %17 : vector<16x1xf32>
      %c0_12 = arith.constant 0 : index
      %c0_13 = arith.constant 0 : index
      %19 = vector.load %arg12[%c0_12, %c0_13] : memref<16x1xf32, #tpu.memory_space<vmem>>, vector<16x1xf32>
      tpu.vector_store %arg12[%c0_12, %c0_13], %18 {strides = array<i32>} : memref<16x1xf32, #tpu.memory_space<vmem>>, vector<16x1xf32>,
      %c0_14 = arith.constant 0 : index
      %c0_15 = arith.constant 0 : index
      %20 = vector.load %arg13[%c0_14, %c0_15] : memref<16x1xf32, #tpu.memory_space<vmem>>, vector<16x1xf32>
      %21 = arith.mulf %5, %5 : vector<16x8xf32>
      %cst_16 = arith.constant dense<0.000000e+00> : vector<16xf32>
      %22 = vector.multi_reduction <add>, %21, %cst_16 [1] : vector<16x8xf32> to vector<16xf32>
      %23 = vector.shape_cast %22 : vector<16xf32> to vector<16x1xf32>
      %24 = arith.addf %20, %23 : vector<16x1xf32>
      %c0_17 = arith.constant 0 : index
      %c0_18 = arith.constant 0 : index
      %25 = vector.load %arg13[%c0_17, %c0_18] : memref<16x1xf32, #tpu.memory_space<vmem>>, vector<16x1xf32>
      tpu.vector_store %arg13[%c0_17, %c0_18], %24 {strides = array<i32>} : memref<16x1xf32, #tpu.memory_space<vmem>>, vector<16x1xf32>,
    } else {
    }
    %c1_i32 = arith.constant 1 : i32
    %9 = arith.cmpi eq, %arg0, %c1_i32 : i32
    %10 = arith.extui %9 : i1 to i32
    %c0_i32_6 = arith.constant 0 : i32
    %11 = arith.cmpi ne, %10, %c0_i32_6 : i32
    scf.if %11 {
      %c0_i32_7 = arith.constant 0 : i32
      %12 = arith.cmpi eq, %arg1, %c0_i32_7 : i32
      %13 = arith.extui %12 : i1 to i32
      %c0_i32_8 = arith.constant 0 : i32
      %14 = arith.cmpi ne, %13, %c0_i32_8 : i32
      scf.if %14 {
        %c0_26 = arith.constant 0 : index
        %c0_27 = arith.constant 0 : index
        %61 = vector.load %arg12[%c0_26, %c0_27] : memref<16x1xf32, #tpu.memory_space<vmem>>, vector<16x1xf32>
        %cst_28 = arith.constant 1.250000e-01 : f32
        %62 = vector.broadcast %cst_28 : f32 to vector<16x1xf32>
        %63 = arith.mulf %61, %62 : vector<16x1xf32>
        %c0_29 = arith.constant 0 : index
        %c0_30 = arith.constant 0 : index
        %64 = vector.load %arg13[%c0_29, %c0_30] : memref<16x1xf32, #tpu.memory_space<vmem>>, vector<16x1xf32>
        %cst_31 = arith.constant 1.250000e-01 : f32
        %65 = vector.broadcast %cst_31 : f32 to vector<16x1xf32>
        %66 = arith.mulf %64, %65 : vector<16x1xf32>
        %67 = arith.mulf %63, %63 : vector<16x1xf32>
        %68 = arith.subf %66, %67 : vector<16x1xf32>
        %cst_32 = arith.constant 0.000000e+00 : f32
        %69 = vector.broadcast %cst_32 : f32 to vector<16x1xf32>
        %70 = arith.maximumf %68, %69 : vector<16x1xf32>
        %c0_33 = arith.constant 0 : index
        %c0_34 = arith.constant 0 : index
        %71 = vector.load %arg5[%c0_33, %c0_34] : memref<16x1xf32, #tpu.memory_space<vmem>>, vector<16x1xf32>
        %cst_35 = arith.constant 9.99999974E-6 : f32
        %72 = vector.broadcast %cst_35 : f32 to vector<16x1xf32>
        %73 = arith.addf %70, %72 : vector<16x1xf32>
        %74 = math.rsqrt %73 : vector<16x1xf32>
        %75 = arith.mulf %71, %74 : vector<16x1xf32>
        %c0_36 = arith.constant 0 : index
        %c0_37 = arith.constant 0 : index
        %76 = vector.load %arg6[%c0_36, %c0_37] : memref<16x1xf32, #tpu.memory_space<vmem>>, vector<16x1xf32>
        %77 = arith.mulf %63, %75 : vector<16x1xf32>
        %78 = arith.subf %76, %77 : vector<16x1xf32>
        %c0_38 = arith.constant 0 : index
        %c0_39 = arith.constant 0 : index
        %79 = vector.load %arg7[%c0_38, %c0_39] : memref<16x1xf32, #tpu.memory_space<vmem>>, vector<16x1xf32>
        %80 = arith.mulf %75, %79 : vector<16x1xf32>
        %c0_40 = arith.constant 0 : index
        %c0_41 = arith.constant 0 : index
        %81 = vector.load %arg14[%c0_40, %c0_41] : memref<16x1xf32, #tpu.memory_space<vmem>>, vector<16x1xf32>
        tpu.vector_store %arg14[%c0_40, %c0_41], %80 {strides = array<i32>} : memref<16x1xf32, #tpu.memory_space<vmem>>, vector<16x1xf32>,
        %c0_42 = arith.constant 0 : index
        %c0_43 = arith.constant 0 : index
        %82 = vector.load %arg7[%c0_42, %c0_43] : memref<16x1xf32, #tpu.memory_space<vmem>>, vector<16x1xf32>
        %83 = arith.mulf %78, %82 : vector<16x1xf32>
        %cst_44 = arith.constant dense<0.000000e+00> : vector<1xf32>
        %84 = vector.multi_reduction <add>, %83, %cst_44 [0] : vector<16x1xf32> to vector<1xf32>
        %85 = vector.shape_cast %84 : vector<1xf32> to vector<1x1xf32>
        %c0_45 = arith.constant 0 : index
        %86 = memref.load %arg8[%c0_45] : memref<1xf32, #tpu.memory_space<smem>>
        %87 = vector.broadcast %86 : f32 to vector<1x1xf32>
        %88 = arith.addf %85, %87 : vector<1x1xf32>
        %c0_46 = arith.constant 0 : index
        %c0_47 = arith.constant 0 : index
        %89 = vector.load %arg15[%c0_46, %c0_47] : memref<1x1xf32, #tpu.memory_space<vmem>>, vector<1x1xf32>
        tpu.vector_store %arg15[%c0_46, %c0_47], %88 {strides = array<i32>} : memref<1x1xf32, #tpu.memory_space<vmem>>, vector<1x1xf32>,
      } else {
      }
      %c0_9 = arith.constant 0 : index
      %c0_10 = arith.constant 0 : index
      %15 = vector.load %arg14[%c0_9, %c0_10] : memref<16x1xf32, #tpu.memory_space<vmem>>, vector<16x1xf32>
      %16 = vector.broadcast %15 : vector<16x1xf32> to vector<16x8xf32>
      %17 = arith.mulf %5, %16 : vector<16x8xf32>
      %cst_11 = arith.constant dense<0.000000e+00> : vector<8xf32>
      %18 = vector.multi_reduction <add>, %17, %cst_11 [0] : vector<16x8xf32> to vector<8xf32>
      %19 = vector.shape_cast %18 : vector<8xf32> to vector<1x8xf32>
      %c0_12 = arith.constant 0 : index
      %c0_13 = arith.constant 0 : index
      %20 = vector.load %arg15[%c0_12, %c0_13] : memref<1x1xf32, #tpu.memory_space<vmem>>, vector<1x1xf32>
      %21 = vector.broadcast %20 : vector<1x1xf32> to vector<1x8xf32>
      %22 = arith.addf %19, %21 : vector<1x8xf32>
      %c0_14 = arith.constant 0 : index
      %c0_15 = arith.constant 0 : index
      %23 = vector.load %arg10[%c0_14, %c0_15] : memref<1x8xi32, #tpu.memory_space<vmem>>, vector<1x8xi32>
      %c0_16 = arith.constant 0 : index
      %24 = memref.load %arg9[%c0_16] : memref<4xf32, #tpu.memory_space<smem>>
      %25 = vector.broadcast %24 : f32 to vector<1x8xf32>
      %c1_i32_17 = arith.constant 1 : i32
      %26 = vector.broadcast %c1_i32_17 : i32 to vector<1x8xi32>
      %27 = arith.cmpi eq, %23, %26 : vector<1x8xi32>
      %c1 = arith.constant 1 : index
      %28 = memref.load %arg9[%c1] : memref<4xf32, #tpu.memory_space<smem>>
      %29 = vector.broadcast %28 : f32 to vector<1x8xf32>
      %30 = arith.select %27, %29, %25 : vector<1x8xi1>, vector<1x8xf32>
      %c2_i32 = arith.constant 2 : i32
      %31 = vector.broadcast %c2_i32 : i32 to vector<1x8xi32>
      %32 = arith.cmpi eq, %23, %31 : vector<1x8xi32>
      %c2 = arith.constant 2 : index
      %33 = memref.load %arg9[%c2] : memref<4xf32, #tpu.memory_space<smem>>
      %34 = vector.broadcast %33 : f32 to vector<1x8xf32>
      %35 = arith.select %32, %34, %30 : vector<1x8xi1>, vector<1x8xf32>
      %c3_i32 = arith.constant 3 : i32
      %36 = vector.broadcast %c3_i32 : i32 to vector<1x8xi32>
      %37 = arith.cmpi eq, %23, %36 : vector<1x8xi32>
      %c3 = arith.constant 3 : index
      %38 = memref.load %arg9[%c3] : memref<4xf32, #tpu.memory_space<smem>>
      %39 = vector.broadcast %38 : f32 to vector<1x8xf32>
      %40 = arith.select %37, %39, %35 : vector<1x8xi1>, vector<1x8xf32>
      %cst_18 = arith.constant 0.000000e+00 : f32
      %41 = vector.broadcast %cst_18 : f32 to vector<1x8xf32>
      %42 = arith.maximumf %40, %41 : vector<1x8xf32>
      %43 = arith.mulf %22, %42 : vector<1x8xf32>
      %cst_19 = arith.constant 2.000000e+01 : f32
      %44 = vector.broadcast %cst_19 : f32 to vector<1x8xf32>
      %45 = arith.cmpf ogt, %43, %44 : vector<1x8xf32>
      %cst_20 = arith.constant 2.000000e+01 : f32
      %46 = vector.broadcast %cst_20 : f32 to vector<1x8xf32>
      %47 = arith.minimumf %43, %46 : vector<1x8xf32>
      %48 = math.exp %47 : vector<1x8xf32>
      %49 = math.log1p %48 : vector<1x8xf32>
      %50 = arith.select %45, %43, %49 : vector<1x8xi1>, vector<1x8xf32>
      %51 = tpu.reciprocal %42 {approx = true} : vector<1x8xf32> -> vector<1x8xf32>
      %52 = arith.mulf %50, %51 : vector<1x8xf32>
      %c0_21 = arith.constant 0 : index
      %c0_22 = arith.constant 0 : index
      %53 = vector.load %arg11[%c0_21, %c0_22] : memref<1x1xf32, #tpu.memory_space<vmem>>, vector<1x1xf32>
      %54 = vector.shape_cast %52 : vector<1x8xf32> to vector<1x1x8xf32>
      %cst_23 = arith.constant dense<0.000000e+00> : vector<1xf32>
      %55 = vector.multi_reduction <add>, %54, %cst_23 [1, 2] : vector<1x1x8xf32> to vector<1xf32>
      %56 = vector.shape_cast %55 : vector<1xf32> to vector<1x1x1xf32>
      %57 = vector.extract %56[0, 0, 0] : f32 from vector<1x1x1xf32>
      %58 = vector.broadcast %57 : f32 to vector<1x1xf32>
      %59 = arith.addf %53, %58 : vector<1x1xf32>
      %c0_24 = arith.constant 0 : index
      %c0_25 = arith.constant 0 : index
      %60 = vector.load %arg11[%c0_24, %c0_25] : memref<1x1xf32, #tpu.memory_space<vmem>>, vector<1x1xf32>
      tpu.vector_store %arg11[%c0_24, %c0_25], %59 {strides = array<i32>} : memref<1x1xf32, #tpu.memory_space<vmem>>, vector<1x1xf32>,
    } else {
    }
    return
  }
  func.func @transform_0(%arg0: i32, %arg1: i32) -> (i32, i32) {
    %c0_i32 = arith.constant 0 : i32
    %c0_i32_0 = arith.constant 0 : i32
    return %c0_i32, %arg1 : i32, i32
  }
  func.func @transform_1(%arg0: i32, %arg1: i32) -> (i32, i32) {
    %c0_i32 = arith.constant 0 : i32
    %c0_i32_0 = arith.constant 0 : i32
    %c0_i32_1 = arith.constant 0 : i32
    return %c0_i32, %c0_i32_0 : i32, i32
  }
  func.func @transform_2(%arg0: i32, %arg1: i32) -> (i32, i32) {
    %c0_i32 = arith.constant 0 : i32
    %c0_i32_0 = arith.constant 0 : i32
    %c0_i32_1 = arith.constant 0 : i32
    return %c0_i32, %c0_i32_0 : i32, i32
  }
  func.func @transform_3(%arg0: i32, %arg1: i32) -> (i32, i32) {
    %c0_i32 = arith.constant 0 : i32
    %c0_i32_0 = arith.constant 0 : i32
    %c0_i32_1 = arith.constant 0 : i32
    return %c0_i32, %c0_i32_0 : i32, i32
  }
  func.func @transform_4(%arg0: i32, %arg1: i32) -> (i32, i32) {
    %c0_i32 = arith.constant 0 : i32
    %c0_i32_0 = arith.constant 0 : i32
    %c0_i32_1 = arith.constant 0 : i32
    return %c0_i32, %c0_i32_0 : i32, i32
  }
  func.func @transform_5(%arg0: i32, %arg1: i32) -> (i32, i32) {
    %c0_i32 = arith.constant 0 : i32
    %c0_i32_0 = arith.constant 0 : i32
    %c0_i32_1 = arith.constant 0 : i32
    return %c0_i32, %c0_i32_0 : i32, i32
  }
  func.func @transform_6(%arg0: i32, %arg1: i32) -> i32 {
    %c0_i32 = arith.constant 0 : i32
    %c0_i32_0 = arith.constant 0 : i32
    return %c0_i32 : i32
  }
  func.func @transform_7(%arg0: i32, %arg1: i32) -> i32 {
    %c0_i32 = arith.constant 0 : i32
    %c0_i32_0 = arith.constant 0 : i32
    return %c0_i32 : i32
  }
  func.func @transform_8(%arg0: i32, %arg1: i32) -> (i32, i32) {
    %c0_i32 = arith.constant 0 : i32
    %c0_i32_0 = arith.constant 0 : i32
    return %c0_i32, %arg1 : i32, i32
  }
  func.func @transform_9(%arg0: i32, %arg1: i32) -> (i32, i32) {
    %c0_i32 = arith.constant 0 : i32
    %c0_i32_0 = arith.constant 0 : i32
    %c0_i32_1 = arith.constant 0 : i32
    return %c0_i32, %c0_i32_0 : i32, i32
  }
}

</mosaic_0001>

<bundles_post_ra>
// kernel: tpu_custom_call.1
= control target key start
LH: loop header
LB: loop body
LE: loop exit
PB: predicated region body
PF: predicated region fallthrough
CT: control target
= control target key end

     0   :  { %s1078_s0 = inlined_call_operand.vmem [shape: bf16[32,8], index: 0, kind: input, shape index: {}]   ;;  %s1079_s1 = inlined_call_operand.vmem [shape: bf16[16,32], index: 1, kind: input, shape index: {}]   ;;  %s1080_s2 = inlined_call_operand.vmem [shape: f32[16,1], index: 2, kind: input, shape index: {}]   ;;  %s1081_s3 = inlined_call_operand.vmem [shape: f32[16,1], index: 3, kind: input, shape index: {}]   ;;  %s1082_s4 = inlined_call_operand.vmem [shape: f32[16,1], index: 4, kind: input, shape index: {}]   ;;  %s1083_s5 = inlined_call_operand.vmem [shape: f32[16,1], index: 5, kind: input, shape index: {}]   ;;  %s1084_s6 = inlined_call_operand.<no memory space> [shape: f32[1], index: 6, kind: input, shape index: {}]   ;;  %s1085_s7 = inlined_call_operand.vmem [shape: f32[4], index: 7, kind: input, shape index: {}]   ;;  %s1086_s8 = inlined_call_operand.vmem [shape: s32[1,8], index: 8, kind: input, shape index: {}]   ;;  %s1087_s9 = inlined_call_operand.hbm [shape: f32[1,1], index: 9, kind: output, shape index: {}]  }
   0x1   :  { %14 = sst [smem:[#allocation6]] %s1084_s6 }
   0x2   :  { %15 = vsyncpa [#allocation9], 0 }
   0x3   :  { %16 = vsyncpa [#allocation8], 0  ;;  %s937_s11 = smov 0   ;;  %s939_s12 = smov 0  }
   0x4   :  { %s941_s13 = smov 0  }
   0x5 LB: > { %s708_s6 = sadd.s32 4294967295, %s875_s13   ;;  %s34_s14 = sadd.s32 1, %s871_s12  ;;  %s875_s13 = sphi %s941_s13, %s22_s13   ;;  %s871_s12 = sphi %s939_s12, %s1092_s12   ;;  %s867_s11 = sphi %s937_s11, %s1091_s11  }
   0x6   : > { %p36_p0 = scmp.ge.s32.totalorder %s34_s14, 2  ;;  %p709_p1 = scmp.ge.s32.totalorder %s875_s13, 1 }
   0x7   : > { %p259_p2 = scmp.lt.s32.totalorder %s875_s13, 3  ;;  %p964_p4 = scmp.eq.s32.totalorder %s708_s6, 0 }
   0x8   : > { %s1094_s14 = smov (%p36_p0, %s34_s14), 0  ;;  %s297_s19 = sshll.u32 %s1085_s7, 4  ;;  %s298_s19 = int_to_ptr.vmem [resolvable:$true] %s297_s19 }
   0x9   : > { %p958_p3 = pnand %p709_p1, %p259_p2  ;;  %s804_s20 = scalar_lea.vmem %s298_s19, 16 }
   0xa   : > { %p805_p7 = scmp.ne.s32.totalorder %s298_s19, %s804_s20  ;;  %p812_p11 = scmp.lt.s32.totalorder %s298_s19, %s298_s19 }
   0xb   : > { %p749_p5 = pneg %p958_p3  ;;  %p813_p12 = scmp.lt.s32.totalorder %s804_s20, %s804_s20 }
   0xd   : > { %p750_p6 = pnand %p964_p4, %p749_p5  ;;  %p814_p13 = por %p813_p12, %p812_p11 }
   0xf   : > { %p806_p8 = pneg %p750_p6 }
  0x11   : > { %p807_p9 = pnand %p806_p8, %p805_p7 }
  0x13   : > { %p808_p10 = pneg %p807_p9 }
  0x15   : > { %p815_p0 = pnand %p814_p13, %p808_p10 }
  0x17   : > { %818 = shalt.err (!%p815_p0)
}
  0x18   : > { %s877_s21 = smov [#allocation7]   ;;  %316 = sbr.rel (%p958_p3) target bundleno = 870 (0x366), region = 56 }
  0x19   : > { %752 = dma.vmem_to_smem (!%p750_p6), %s298_s19, 16, %s877_s21, [#allocation9]  }
  0x1f   : > { %858 = dma.done.wait (%p964_p4), [#allocation9], 16  }
  0x20   : > { %860 = vsyncadd (%p964_p4), [#allocation9], 4294967280 }
  0x21   : > { %322 = sfence }
  0x22   : > { %v789_v0 = vld [vmem:[%s1078_s0] sm:$0xff]   ;;  %v878_v1 = vmov 0.0   ;;  %v790_v2 = vld [vmem:[%s1078_s0 + $0x8] sm:$0xff]   ;;  %vm879_vm0 = vmmov 0   ;;  %v880_v4 = vmov 0   ;;  %vm393_vm1 = vcmask 261120  }
  0x23   : > { %731 = vmatprep.subr.bf16.mxu0 %v878_v1  ;;  %735 = vmatprep.mubr.msk.bf16.mxu0 %vm879_vm0, %v878_v1  ;;  %v364_v3 = vld [vmem:[%s1080_s2] sm:$0xff]  ;;  %v365_v6 = vld [vmem:[%s1080_s2 + $0x8] sm:$0xff]  ;;  %p719_p1 = scmp.ne.s32.totalorder %s867_s11, 0 }
  0x24   : > { %732 = vmatpush3.bf16.msra.mxu0 %v789_v0  ;;  %788 = vset.pattern.permute.xlu0 %v880_v4  ;;  %v791_v5 = vld [vmem:[%s1079_s1] sm:$0xff]   ;;  %vm455_vm2 = vcmask (!%p719_p1), 64512   ;;  %vm446_vm3 = vcmask (!%p719_p1), 7168   ;;  %v881_v21 = vmov (!%p719_p1), 0.0   ;;  %vm451_vm4 = vcmask (!%p719_p1), 0  }
  0x25   : > { %733 = vmatprep.subr.bf16.mxu0 %v878_v1  ;;  %368 = vperm.xlu0 %788, %v364_v3   ;;  %449 = vst.msk [vmem:[#allocation3] sm:$0xff] (!%p719_p1), %vm446_vm3, %v881_v21  ;;  %447 = vst.msk [vmem:[#allocation2] sm:$0xff] (!%p719_p1), %vm446_vm3, %v881_v21 }
  0x26   : > { %448 = vst.msk [vmem:[#allocation2 + $0x8] sm:$0xff] (!%p719_p1), %vm446_vm3, %v881_v21  ;;  %450 = vst.msk [vmem:[#allocation3 + $0x8] sm:$0xff] (!%p719_p1), %vm446_vm3, %v881_v21 }
  0x27   : > { %452 = vst.msk [vmem:[#allocation10] sm:$0x1] (!%p719_p1), %vm451_vm4, %v881_v21 }
  0x28   : > { %734 = vmatpush3.bf16.msra.mxu0 %v790_v2 }
  0x29   : > { %373 = vperm.xlu0 %788, %v365_v6  }
  0x2b   : > { %736 = vmatmul.mubr.msk.bf16.vlgmr.msra.gmra.mrb[0].mxu0 %vm393_vm1, %v791_v5 }
  0x2c   : > { %v453_v22 = vld [vmem:[#allocation2] sm:$0xff] (!%p719_p1)  ;;  %v467_v23 = vld [vmem:[#allocation3] sm:$0xff] (!%p719_p1) }
  0x2d   : > { %v454_v28 = vld [vmem:[#allocation2 + $0x8] sm:$0xff] (!%p719_p1)  ;;  %v468_v29 = vld [vmem:[#allocation3 + $0x8] sm:$0xff] (!%p719_p1) }
  0xa4   : > { %v369_v7 = vpop.permute.xlu0 %368 }
  0xa8   : > { %v374_v11 = vpop.permute.xlu0 %373 }
  0xfb   : > { %441 = sbr.rel (%p719_p1) target bundleno = 409 (0x199), region = 64 }
  0xfe   : > { %v431_v8 = vpop.f32.mrb[0].mxu0 }
  0xff   : > { %v996_v9 = vadd.f32 %v431_v8, %v369_v7  ;;  %v737_v10 = vpop.f32.mrb[1].mxu0 }
 0x100   : > { %v434_v12 = vpop.f32.mrb[2].mxu0 }
 0x101   : > { %v998_v13 = vadd.f32 %v434_v12, %v374_v11  ;;  %v738_v14 = vpop.f32.mrb[3].mxu0  ;;  %v469_v15 = vmul.f32 (!%p719_p1), %v996_v9, %v996_v9  ;;  %v456_v17 = vsel (!%p719_p1), %vm455_vm2, %v996_v9, 0.0 }
 0x102   : > { %457 = vadd.xlane.f32.xlu0 %v456_v17 }
 0x103   : > { %v470_v16 = vmul.f32 %v998_v13, %v998_v13  ;;  %v471_v18 = vsel %vm455_vm2, %v469_v15, 0.0  ;;  %v459_v19 = vsel %vm455_vm2, %v998_v13, 0.0 }
 0x104   : > { %472 = vadd.xlane.f32.xlu1 %v471_v18 }
 0x105   : > { %v474_v20 = vsel %vm455_vm2, %v470_v16, 0.0 }
 0x106   : > { %460 = vadd.xlane.f32.xlu0 %v459_v19 }
 0x108   : > { %475 = vadd.xlane.f32.xlu1 %v474_v20 }
 0x18f   : > { %v458_v24 = vpop.xlane.xlu0 %457 }
 0x190   : > { %v462_v26 = vadd.f32 %v458_v24, %v453_v22 }
 0x191   : > { %v473_v25 = vpop.xlane.xlu1 %472 }
 0x192   : > { %v477_v27 = vadd.f32 %v473_v25, %v467_v23  ;;  %465 = vst.msk [vmem:[#allocation2] sm:$0xff] %vm446_vm3, %v462_v26 }
 0x193   : > { %v461_v30 = vpop.xlane.xlu0 %460 }
 0x194   : > { %479 = vst.msk [vmem:[#allocation3] sm:$0xff] %vm446_vm3, %v477_v27  ;;  %v463_v32 = vadd.f32 %v461_v30, %v454_v28 }
 0x195   : > { %v476_v31 = vpop.xlane.xlu1 %475 }
 0x196   : > { %v478_v33 = vadd.f32 %v476_v31, %v468_v29  ;;  %466 = vst.msk [vmem:[#allocation2 + $0x8] sm:$0xff] %vm446_vm3, %v463_v32 }
 0x198   : > { %480 = vst.msk [vmem:[#allocation3 + $0x8] sm:$0xff] %vm446_vm3, %v478_v33 }
 0x199 PF: > { %p720_p2 = scmp.ne.s32.totalorder %s867_s11, 1 }
 0x19a   : > { %v489_v34 = vld [vmem:[#allocation2] sm:$0xff] (!%p720_p2)  ;;  %v882_v36 = vmov (!%p720_p2), 0   ;;  %v504_v52 = vld [vmem:[%s1081_s3 + $0x8] sm:$0xff] (!%p720_p2)  ;;  %vm521_vm5 = vcmask (!%p720_p2), 7168   ;;  %s537_s26 = sld [smem:[#allocation6]] (!%p720_p2)  ;;  %vm540_vm6 = vcmask (!%p720_p2), 0   ;;  %v572_v30 = vlaneseq (!%p720_p2) }
 0x19b   : > { %484 = sbr.rel (%p720_p2) target bundleno = 845 (0x34d), region = 72  ;;  %v493_v35 = vld [vmem:[#allocation3] sm:$0xff] (!%p720_p2)  ;;  %792 = vset.pattern.permute.xlu0 (!%p720_p2), %v882_v36  ;;  %v491_v37 = vmul.f32 (!%p720_p2), 0.125, %v489_v34  ;;  %793 = vset.pattern.permute.xlu1 (!%p720_p2), %v882_v36  ;;  %v503_v51 = vld [vmem:[%s1081_s3] sm:$0xff] (!%p720_p2)  ;;  %v518_v57 = vld [vmem:[%s1083_s5 + $0x8] sm:$0xff] (!%p720_p2)  ;;  %s578_s27 = sld [smem:[#allocation7]] (!%p720_p2) }
 0x19c   : > { %v495_v38 = vmul.f32 (!%p720_p2), 0.125, %v493_v35  ;;  %v517_v54 = vld [vmem:[%s1083_s5] sm:$0xff] (!%p720_p2)  ;;  %v512_v62 = vld [vmem:[%s1082_s4 + $0x8] sm:$0xff] (!%p720_p2)  ;;  %s721_s28 = sld [smem:[#allocation7 + $0x1]] (!%p720_p2)  ;;  %vm556_vm7 = vcmask (!%p720_p2), 64512   ;;  %s722_s29 = sld [smem:[#allocation7 + $0x2]] (!%p720_p2) }
 0x19d   : > { %v490_v39 = vld [vmem:[#allocation2 + $0x8] sm:$0xff] (!%p720_p2)  ;;  %v497_v42 = vmul.f32 (!%p720_p2), %v491_v37, %v491_v37  ;;  %v511_v58 = vld [vmem:[%s1082_s4] sm:$0xff] (!%p720_p2)  ;;  %s723_s11 = sld [smem:[#allocation7 + $0x3]] (!%p720_p2)  ;;  %vm611_vm13 = vcmask (!%p720_p2), 57344  }
 0x19e   : > { %v492_v40 = vmul.f32 (!%p720_p2), 0.125, %v490_v39  ;;  %v577_v28 = vld [vmem:[%s1086_s8] sm:$0x1] (!%p720_p2) }
 0x19f   : > { %v494_v41 = vld [vmem:[#allocation3 + $0x8] sm:$0xff] (!%p720_p2)  ;;  %v499_v45 = vsub.f32 (!%p720_p2), %v495_v38, %v497_v42  ;;  %vm580_vm8 = vcmp.eq.s32.totalorder (!%p720_p2), %v577_v28, 1  ;;  %vm584_vm9 = vcmp.eq.s32.totalorder (!%p720_p2), %v577_v28, 2  ;;  %vm588_vm10 = vcmp.eq.s32.totalorder (!%p720_p2), %v577_v28, 3 }
 0x1a0   : > { %v496_v43 = vmul.f32 (!%p720_p2), 0.125, %v494_v41  ;;  %v498_v44 = vmul.f32 (!%p720_p2), %v492_v40, %v492_v40  ;;  %v538_v17 = vstv (!%p720_p2), %s537_s26 }
 0x1a1   : > { %v501_v47 = vmax.f32 (!%p720_p2), %v499_v45, 0.0  ;;  %v579_v31 = vstv (!%p720_p2), %s578_s27 }
 0x1a2   : > { %v500_v46 = vsub.f32 %v496_v43, %v498_v44  ;;  %v586_v35 = vstv %s722_s29 }
 0x1a3   : > { %v505_v49 = vadd.f32 1e-05, %v501_v47  ;;  %v590_v38 = vstv %s723_s11 }
 0x1a4   : > { %v502_v48 = vmax.f32 %v500_v46, 0.0 }
 0x1a5   : > { %794 = vrsqrt.f32 %v505_v49 }
 0x1a6   : > { %v506_v50 = vadd.f32 1e-05, %v502_v48 }
 0x1a8   : > { %796 = vrsqrt.f32 %v506_v50 }
 0x1af   : > { %v795_v53 = vpop.eup %794 }
 0x1b0   : > { %v509_v56 = vmul.f32 %v795_v53, %v503_v51 }
 0x1b2   : > { %v797_v55 = vpop.eup %796  ;;  %v519_v60 = vmul.f32 %v517_v54, %v509_v56  ;;  %v513_v61 = vmul.f32 %v509_v56, %v491_v37 }
 0x1b3   : > { %v510_v59 = vmul.f32 %v797_v55, %v504_v52 }
 0x1b4   : > { %522 = vst.msk [vmem:[#allocation4] sm:$0xff] %vm521_vm5, %v519_v60  ;;  %v515_v1 = vsub.f32 %v511_v58, %v513_v61 }
 0x1b5   : > { %v514_v63 = vmul.f32 %v510_v59, %v492_v40  ;;  %v520_v0 = vmul.f32 %v518_v57, %v510_v59 }
 0x1b6   : > { %v526_v3 = vmul.f32 %v517_v54, %v515_v1 }
 0x1b7   : > { %v516_v2 = vsub.f32 %v512_v62, %v514_v63  ;;  %523 = vst.msk [vmem:[#allocation4 + $0x8] sm:$0xff] %vm521_vm5, %v520_v0 }
 0x1b8   : > { %v528_v5 = vsel %vm521_vm5, %v526_v3, 0.0 }
 0x1b9   : > { %v527_v4 = vmul.f32 %v518_v57, %v516_v2 }
 0x1bb   : > { %v529_v6 = vsel %vm521_vm5, %v527_v4, 0.0  ;;  %v542_v8 = vld [vmem:[#allocation4] sm:$0xff] }
 0x1bc   : > { %v530_v7 = vadd.f32 %v529_v6, %v528_v5  ;;  %546 = vperm.xlu0 %792, %v542_v8   ;;  %v610_v6 = vld [vmem:[#allocation10] sm:$0x1] }
 0x1be   : > { %v531_v10 = vrot.slane %v530_v7, 4  ;;  %v543_v11 = vld [vmem:[#allocation4 + $0x8] sm:$0xff] }
 0x1c0   : > { %v532_v12 = vadd.f32 %v531_v10, %v530_v7  ;;  %551 = vperm.xlu0 %792, %v543_v11  }
 0x1c2   : > { %v533_v14 = vrot.slane %v532_v12, 2 }
 0x1c4   : > { %v534_v15 = vadd.f32 %v533_v14, %v532_v12 }
 0x1c6   : > { %v535_v16 = vrot.slane %v534_v15, 1 }
 0x1c8   : > { %v536_v18 = vadd.f32 %v535_v16, %v534_v15 }
 0x1ca   : > { %v539_v19 = vadd.f32 %v538_v17, %v536_v18 }
 0x1cc   : > { %541 = vst.msk [vmem:[#allocation5] sm:$0x1] %vm540_vm6, %v539_v19 }
 0x1d3   : > { %v566_v20 = vld [vmem:[#allocation5] sm:$0x1] }
 0x1d4   : > { %569 = vperm.xlu1 %793, %v566_v20  }
 0x23b   : > { %v547_v21 = vpop.permute.xlu0 %546 }
 0x23c   : > { %v554_v22 = vmul.f32 %v547_v21, %v996_v9  ;;  %v582_v9 = vstv %s721_s28 }
 0x23d   : > { %v583_v34 = vsel %vm580_vm8, %v582_v9, %v579_v31 }
 0x23e   : > { %v557_v25 = vsel %vm556_vm7, %v554_v22, 0.0  ;;  %v587_v37 = vsel %vm584_vm9, %v586_v35, %v583_v34 }
 0x23f   : > { %v552_v23 = vpop.permute.xlu0 %551  ;;  %v591_v41 = vsel %vm588_vm10, %v590_v38, %v587_v37 }
 0x240   : > { %v555_v24 = vmul.f32 %v552_v23, %v998_v13  ;;  %v573_v13 = vshrl.u32 %v572_v30, 7  ;;  %v592_v44 = vmax.f32 %v591_v41, 0.0 }
 0x242   : > { %v558_v26 = vsel %vm556_vm7, %v555_v24, 0.0  ;;  %v574_v40 = vsub.s32 0, %v573_v13 }
 0x243   : > { %v559_v27 = vadd.f32 %v558_v26, %v557_v25 }
 0x245   : > { %v560_v29 = vrot.slane %v559_v27, 4 }
 0x247   : > { %v561_v32 = vadd.f32 %v560_v29, %v559_v27 }
 0x249   : > { %v562_v33 = vrot.slane %v561_v32, 2 }
 0x24b   : > { %v563_v36 = vadd.f32 %v562_v33, %v561_v32 }
 0x24d   : > { %v564_v39 = vrot.slane %v563_v36, 1 }
 0x24f   : > { %v565_v43 = vadd.f32 %v564_v39, %v563_v36 }
 0x253   : > { %v570_v42 = vpop.permute.xlu1 %569 }
 0x254   : > { %v575_v45 = vrot.slane %v570_v42, %v574_v40 }
 0x256   : > { %v576_v46 = vadd.f32 %v575_v45, %v565_v43 }
 0x258   : > { %v593_v47 = vmul.f32 %v592_v44, %v576_v46 }
 0x25a   : > { %v595_v48 = vmin.f32 %v593_v47, 20.0  ;;  %vm594_vm12 = vcmp.gt.f32.partialorder %v593_v47, 20.0 }
 0x25c   : > { %v596_v49 = vmul.f32 1.442695, %v595_v48 }
 0x25e   : > { %798 = vpow2.f32 %v596_v49 }
 0x268   : > { %v799_v50 = vpop.eup %798 }
 0x269   : > { %v598_v51 = vadd.f32 1.0, %v799_v50  ;;  %v601_v52 = vmul.f32 -0.5, %v799_v50  ;;  %v604_v54 = vand.u32 2147483647, %v799_v50 }
 0x26b   : > { %800 = vlog2.f32 %v598_v51  ;;  %v602_v53 = vadd.f32 1.0, %v601_v52  ;;  %vm605_vm11 = vcmp.lt.f32.partialorder %v604_v54, 0.0004427343 }
 0x26c   : > { %802 = vrcp.f32 %v592_v44 }
 0x26d   : > { %v603_v57 = vmul.f32 %v799_v50, %v602_v53 }
 0x275   : > { %v801_v55 = vpop.eup %800 }
 0x276   : > { %v600_v56 = vmul.f32 0.6931472, %v801_v55  ;;  %v803_v58 = vpop.eup %802 }
 0x278   : > { %v606_v59 = vsel %vm605_vm11, %v603_v57, %v600_v56 }
 0x279   : > { %v607_v60 = vsel %vm594_vm12, %v593_v47, %v606_v59 }
 0x27a   : > { %v609_v61 = vmul.f32 %v803_v58, %v607_v60 }
 0x27c   : > { %v612_v62 = vsel %vm611_vm13, %v609_v61, 0.0 }
 0x27d   : > { %613 = vadd.xlane.f32.xlu1 %v612_v62 }
 0x30a   : > { %v614_v63 = vpop.xlane.xlu1 %613 }
 0x30b   : > { %v615_v0 = vrot.slane %v614_v63, 4 }
 0x30d   : > { %v616_v1 = vadd.f32 %v615_v0, %v614_v63 }
 0x30f   : > { %v617_v2 = vrot.slane %v616_v1, 2 }
 0x311   : > { %v618_v3 = vadd.f32 %v617_v2, %v616_v1 }
 0x313   : > { %v619_v4 = vrot.slane %v618_v3, 1 }
 0x315   : > { %v620_v5 = vadd.f32 %v619_v4, %v618_v3 }
 0x317   : > { %739 = vpush %v620_v5 }
 0x348   : > { %s740_s15 = spop %739 }
 0x349   : > { %v622_v7 = vstv %s740_s15 }
 0x34a   : > { %v623_v8 = vadd.f32 %v622_v7, %v610_v6 }
 0x34c   : > { %625 = vst.msk [vmem:[#allocation10] sm:$0x1] %vm540_vm6, %v623_v8 }
 0x34d PF: > { %p1043_p3 = scmp.eq.s32.totalorder %s708_s6, 1  ;;  %s883_s17 = smov [#allocation10]  }
 0x34e   : > { %s633_s18 = sshll.u32 %s883_s17, 4  ;;  %s634_s18 = int_to_ptr.vmem [resolvable:$true] %s633_s18 }
 0x34f   : > { %s819_s19 = scalar_lea.vmem %s634_s18, 16  ;;  %s825_s20 = scalar_lea.vmem %s634_s18, 32 }
 0x350   : > { %p820_p4 = scmp.ne.s32.totalorder %s634_s18, %s819_s19  ;;  %p826_p7 = scmp.lt.s32.totalorder %s634_s18, %s634_s18 }
 0x351   : > { %p827_p8 = scmp.lt.s32.totalorder %s825_s20, %s819_s19 }
 0x352   : > { %p821_p5 = pnand %p820_p4, %p1043_p3 }
 0x353   : > { %p828_p9 = por %p827_p8, %p826_p7 }
 0x354   : > { %p822_p6 = pneg %p821_p5 }
 0x356   : > { %p829_p10 = pnand %p828_p9, %p822_p6 }
 0x358   : > { %832 = shalt.err (!%p829_p10)
}
 0x359   : > { %s833_s22 = scalar_lea.hbm %s1087_s9, 16 }
 0x35a   : > { %p834_p11 = scmp.ne.s32.totalorder %s1087_s9, %s833_s22  ;;  %p839_p0 = scmp.lt.u32.totalorder %s833_s22, %s1087_s9 }
 0x35c   : > { %p835_p12 = pnand %p834_p11, %p1043_p3 }
 0x35e   : > { %p836_p13 = pneg %p835_p12 }
 0x360   : > { %p841_p1 = pnand %p839_p0, %p836_p13 }
 0x362   : > { %844 = shalt.err (!%p841_p1)
}
 0x363   : > { %746 = dma.vmem_to_hbm [thread:$0]  (%p1043_p3), %s634_s18, 16, %s1087_s9, [#allocation8]  }
 0x364   : > { %862 = dma.done.wait (%p1043_p3), [#allocation8], 16  }
 0x365   : > { %864 = vsyncadd (%p1043_p3), [#allocation8], 4294967280 }
 0x366 PF: > { %s22_s13 = sadd.s32 1, %s875_s13   ;;  %s1091_s11 = smov %s871_s12 }
 0x367   : > { %p19_p2 = scmp.ge.s32.totalorder %s22_s13, 4   ;;  %s1092_s12 = smov %s1094_s14 }
 0x369   :  { %21 = sbr.rel (!%p19_p2) target bundleno = 5 (0x5), region = 107 }
 0x370   :  { %646 = vsyncpa [#allocation8], 1 }
 0x371   :  { %648 = vsyncpa [#allocation8 + $0x1], 1 }
 0x372   :  { %649 = vsyncpa [#allocation9], 1 }
 0x373   :  { %651 = vsyncpa [#allocation9 + $0x1], 1 }

</bundles_post_ra>
